<compile_context>
chip_gen: v7x
topology: tpu7x:2x2x1
jax: 0.10.0
libtpu: 0.0.40
codegen_flags: <defaults>
</compile_context>

<pallas_src>
import math
from typing import NamedTuple

import numpy as np
import jax
import jax.numpy as jnp
from jax.experimental import pallas as pl
from jax.experimental.pallas import tpu as pltpu


def _round_up(v, m):
    return (v + m - 1) // m * m


# ----------------------------------------------------------------------------
# Pallas kernel: fused base-linear + LoRA path, tiled over (M, N)
# ----------------------------------------------------------------------------
def lora_linear_kernel(x_ref, wT_ref, b_ref, aT_ref, bT_ref, o_ref, z_ref):
    # z = x @ (scaling * A).T depends only on the row tile -> compute it once
    # per row tile (at the first N tile) and keep it resident in VMEM scratch.
    @pl.when(pl.program_id(1) == 0)
    def _():
        z = jnp.dot(x_ref[...], aT_ref[...],
                    preferred_element_type=jnp.float32)
        z_ref[...] = z.astype(z_ref.dtype)

    # Base matmul + LoRA up-projection, both accumulated in f32 on the MXU.
    acc = jnp.dot(x_ref[...], wT_ref[...],
                  preferred_element_type=jnp.float32)
    acc += jnp.dot(z_ref[...], bT_ref[...],
                   preferred_element_type=jnp.float32)
    o_ref[...] = (acc + b_ref[...]).astype(o_ref.dtype)


# ----------------------------------------------------------------------------
# One-time (init) weight preparation: transpose, fold scaling into A, cast to
# the compute dtype, pad N and R to lane-dense multiples of 128.
# ----------------------------------------------------------------------------
class LoraParams(NamedTuple):
    wT: jax.Array     # (K, N_pad)      compute dtype
    bias: jax.Array   # (1, N_pad)      float32
    aT: jax.Array     # (K, R_pad)      compute dtype, scaling folded in
    bT: jax.Array     # (R_pad, N_pad)  compute dtype
    n_out: int        # true out_features N
    tn: int           # N tile size (multiple of 128, divides N_pad)


def prepare_lora_weights(w_base, b_base, lora_A, lora_B, scaling,
                         *, tn=512, compute_dtype=jnp.bfloat16):
    """w_base: (out, in); lora_A: (r, in); lora_B: (out, r)."""
    N, K = w_base.shape
    R = lora_A.shape[0]
    tn = min(_round_up(tn, 128), _round_up(N, 128))
    N_pad = _round_up(N, tn)
    R_pad = _round_up(max(R, 1), 128)

    wT = jnp.transpose(w_base).astype(compute_dtype)                 # (K, N)
    aT = jnp.transpose(lora_A * scaling).astype(compute_dtype)       # (K, R)
    bT = jnp.transpose(lora_B).astype(compute_dtype)                 # (R, N)
    bias = b_base.astype(jnp.float32).reshape(1, N)

    wT = jnp.pad(wT, ((0, 0), (0, N_pad - N)))
    bias = jnp.pad(bias, ((0, 0), (0, N_pad - N)))
    aT = jnp.pad(aT, ((0, 0), (0, R_pad - R)))
    bT = jnp.pad(bT, ((0, R_pad - R), (0, N_pad - N)))
    return LoraParams(wT=wT, bias=bias, aT=aT, bT=bT, n_out=N, tn=tn)


# ----------------------------------------------------------------------------
# Forward call
# ----------------------------------------------------------------------------
def lora_linear(x, p: LoraParams, *, tm=256):
    """x: (..., in_features) -> (..., out_features)."""
    orig_shape = x.shape
    K = orig_shape[-1]
    M = int(np.prod(orig_shape[:-1]))
    N_pad = p.wT.shape[1]
    R_pad = p.aT.shape[1]
    tn = p.tn
    compute_dtype = p.wT.dtype

    # Ragged M: clamp the tile, pad rows (padded rows are discarded below).
    tm = min(tm, _round_up(M, 8))
    M_pad = _round_up(M, tm)
    nm, nn = M_pad // tm, N_pad // tn

    x2 = x.reshape(M, K).astype(compute_dtype)
    if M_pad != M:
        x2 = jnp.pad(x2, ((0, M_pad - M), (0, 0)))

    out = pl.pallas_call(
        lora_linear_kernel,
        out_shape=jax.ShapeDtypeStruct((M_pad, N_pad), x.dtype),
        grid_spec=pltpu.PrefetchScalarGridSpec(
            num_scalar_prefetch=0,
            grid=(nm, nn),
            in_specs=[
                pl.BlockSpec((tm, K), lambda i, j: (i, 0)),      # x row tile
                pl.BlockSpec((K, tn), lambda i, j: (0, j)),      # W.T tile
                pl.BlockSpec((1, tn), lambda i, j: (0, j)),      # bias tile
                pl.BlockSpec((K, R_pad), lambda i, j: (0, 0)),   # (s*A).T
                pl.BlockSpec((R_pad, tn), lambda i, j: (0, j)),  # B.T tile
            ],
            out_specs=pl.BlockSpec((tm, tn), lambda i, j: (i, j)),
            scratch_shapes=[pltpu.VMEM((tm, R_pad), compute_dtype)],  # z
        ),
        compiler_params=pltpu.CompilerParams(
            dimension_semantics=("parallel", "arbitrary"),
            vmem_limit_bytes=48 * 1024 * 1024,
        ),
    )(x2, p.wT, p.bias, p.aT, p.bT)

    out = out[:M, :p.n_out]
    return out.reshape(*orig_shape[:-1], p.n_out)


# ----------------------------------------------------------------------------
# Supernet weight construction (parameter glue -> plain JAX)
# ----------------------------------------------------------------------------
def build_super_weights(lora_A, lora_B, alpha_params, search_space, max_r):
    alphas = jax.nn.softmax(alpha_params)
    r_idx = jnp.arange(max_r)
    super_A = jnp.zeros_like(lora_A)
    super_B = jnp.zeros_like(lora_B)
    for i, neurons in enumerate(search_space):
        start = (max_r - neurons) // 2
        end = start + neurons
        mask = (r_idx >= start) & (r_idx < end)
        super_A = super_A + lora_A * jnp.where(mask[:, None], alphas[i], 0.0)
        super_B = super_B + lora_B * jnp.where(mask[None, :], alphas[i], 0.0)
    return super_A, super_B


# ----------------------------------------------------------------------------
# Demo / correctness check
# ----------------------------------------------------------------------------
if __name__ == "__main__":
    key = jax.random.PRNGKey(0)
    # Small but tile-exercising shapes: grid = (2, 2) with tm=128, tn=256.
    BATCH, SEQ, IN_F, OUT_F = 2, 128, 128, 512
    TM, TN = 128, 256
    SEARCH_SPACE = (2, 4, 8)
    MAX_R = max(SEARCH_SPACE)                 # rank = max(search_space)
    LORA_ALPHA = 16.0
    SCALING = LORA_ALPHA / MAX_R              # use_rslora = False

    ks = jax.random.split(key, 6)
    x = jax.random.normal(ks[0], (BATCH, SEQ, IN_F), dtype=jnp.float32)
    w_base = jax.random.normal(ks[1], (OUT_F, IN_F), dtype=jnp.float32) * 0.1
    b_base = jax.random.normal(ks[2], (OUT_F,), dtype=jnp.float32) * 0.1
    # kaiming_uniform_(a=sqrt(5)) -> U(-1/sqrt(fan_in), 1/sqrt(fan_in))
    bound_a = 1.0 / math.sqrt(IN_F)
    lora_A = jax.random.uniform(ks[3], (MAX_R, IN_F), jnp.float32,
                                minval=-bound_a, maxval=bound_a)
    # Module inits lora_B to zeros; use small random values here so the LoRA
    # branch actually contributes (synthetic deterministic weights).
    lora_B = jax.random.normal(ks[4], (OUT_F, MAX_R), dtype=jnp.float32) * 0.05
    alpha_params = jax.random.uniform(ks[5], (len(SEARCH_SPACE),), jnp.float32)

    hi = jax.lax.Precision.HIGHEST

    def reference(xf, w, b, a_scaled, bmat):
        # Same math at the kernel's compute precision: bf16 operands, f32
        # accumulation, intermediate z rounded to bf16 (as in the VMEM
        # scratch), so tolerances can stay tight.
        xe = xf.astype(jnp.bfloat16).astype(jnp.float32)
        we = w.astype(jnp.bfloat16).astype(jnp.float32)
        ae = a_scaled.astype(jnp.bfloat16).astype(jnp.float32)
        be = bmat.astype(jnp.bfloat16).astype(jnp.float32)
        base = jnp.dot(xe, we.T, precision=hi) + b
        z = jnp.dot(xe, ae.T, precision=hi)
        z = z.astype(jnp.bfloat16).astype(jnp.float32)
        return base + jnp.dot(z, be.T, precision=hi)

    # ---- standard (non-supernet) LoRA path ----------------------------------
    params_std = prepare_lora_weights(w_base, b_base, lora_A, lora_B, SCALING,
                                      tn=TN)
    out_std = jax.block_until_ready(lora_linear(x, params_std, tm=TM))
    ref_std = reference(x, w_base, b_base, lora_A * SCALING, lora_B)
    np.testing.assert_allclose(np.asarray(out_std), np.asarray(ref_std),
                               rtol=5e-3, atol=5e-3)

    # ---- supernet path -------------------------------------------------------
    super_A, super_B = build_super_weights(lora_A, lora_B, alpha_params,
                                           SEARCH_SPACE, MAX_R)
    params_sup = prepare_lora_weights(w_base, b_base, super_A, super_B, 1.0,
                                      tn=TN)
    out_sup = jax.block_until_ready(lora_linear(x, params_sup, tm=TM))
    ref_sup = reference(x, w_base, b_base, super_A, super_B)
    np.testing.assert_allclose(np.asarray(out_sup), np.asarray(ref_sup),
                               rtol=5e-3, atol=5e-3)

    print("KERNEL_OK")
</pallas_src>

<mosaic_0001>
module attributes {stable_mosaic.version = 11 : i64} {
  func.func @lora_linear_kernel(%arg0: i32, %arg1: i32, %arg2: memref<128x128xbf16, #tpu.memory_space<vmem>>, %arg3: memref<128x256xbf16, #tpu.memory_space<vmem>>, %arg4: memref<1x256xf32, #tpu.memory_space<vmem>>, %arg5: memref<128x128xbf16, #tpu.memory_space<vmem>>, %arg6: memref<128x256xbf16, #tpu.memory_space<vmem>>, %arg7: memref<128x256xf32, #tpu.memory_space<vmem>>, %arg8: memref<128x128xbf16, #tpu.memory_space<vmem>>) attributes {dimension_semantics = [#tpu.dimension_semantics<parallel>, #tpu.dimension_semantics<arbitrary>], iteration_bounds = array<i64: 2, 2>, scalar_prefetch = 0 : i64, scratch_operands = 1 : i64, tpu.core_type = #tpu.core_type<tc>, window_params = [{transform_indices = @transform_0, window_bounds = array<i64: 128, 128>}, {transform_indices = @transform_1, window_bounds = array<i64: 128, 256>}, {transform_indices = @transform_2, window_bounds = array<i64: 1, 256>}, {pipeline_mode = #tpu.pipeline_mode<synchronous>, transform_indices = @transform_3, window_bounds = array<i64: 128, 128>}, {transform_indices = @transform_4, window_bounds = array<i64: 128, 256>}, {transform_indices = @transform_5, window_bounds = array<i64: 128, 256>}]} {
    %c0_i32 = arith.constant 0 : i32
    %0 = arith.cmpi eq, %arg1, %c0_i32 : i32
    %1 = arith.extui %0 : i1 to i32
    %c0_i32_0 = arith.constant 0 : i32
    %2 = arith.cmpi ne, %1, %c0_i32_0 : i32
    scf.if %2 {
      %c0_13 = arith.constant 0 : index
      %c0_14 = arith.constant 0 : index
      %14 = vector.load %arg2[%c0_13, %c0_14] : memref<128x128xbf16, #tpu.memory_space<vmem>>, vector<128x128xbf16>
      %c0_15 = arith.constant 0 : index
      %c0_16 = arith.constant 0 : index
      %15 = vector.load %arg5[%c0_15, %c0_16] : memref<128x128xbf16, #tpu.memory_space<vmem>>, vector<128x128xbf16>
      %cst_17 = arith.constant dense<0.000000e+00> : vector<128x128xf32>
      %16 = tpu.matmul %14, %15, %cst_17 {dimension_numbers = #tpu.dot_dimension_numbers<[1], [0], [0], [1], [0, 0, 1, 1], [], []>} : vector<128x128xbf16>, vector<128x128xbf16>, vector<128x128xf32> -> vector<128x128xf32>
      %17 = arith.truncf %16 : vector<128x128xf32> to vector<128x128xbf16>
      %c0_18 = arith.constant 0 : index
      %c0_19 = arith.constant 0 : index
      %18 = vector.load %arg8[%c0_18, %c0_19] : memref<128x128xbf16, #tpu.memory_space<vmem>>, vector<128x128xbf16>
      tpu.vector_store %arg8[%c0_18, %c0_19], %17 {strides = array<i32>} : memref<128x128xbf16, #tpu.memory_space<vmem>>, vector<128x128xbf16>,
    } else {
    }
    %c0 = arith.constant 0 : index
    %c0_1 = arith.constant 0 : index
    %3 = vector.load %arg2[%c0, %c0_1] : memref<128x128xbf16, #tpu.memory_space<vmem>>, vector<128x128xbf16>
    %c0_2 = arith.constant 0 : index
    %c0_3 = arith.constant 0 : index
    %4 = vector.load %arg3[%c0_2, %c0_3] : memref<128x256xbf16, #tpu.memory_space<vmem>>, vector<128x256xbf16>
    %cst = arith.constant dense<0.000000e+00> : vector<128x256xf32>
    %5 = tpu.matmul %3, %4, %cst {dimension_numbers = #tpu.dot_dimension_numbers<[1], [0], [0], [1], [0, 0, 1, 1], [], []>} : vector<128x128xbf16>, vector<128x256xbf16>, vector<128x256xf32> -> vector<128x256xf32>
    %c0_4 = arith.constant 0 : index
    %c0_5 = arith.constant 0 : index
    %6 = vector.load %arg8[%c0_4, %c0_5] : memref<128x128xbf16, #tpu.memory_space<vmem>>, vector<128x128xbf16>
    %c0_6 = arith.constant 0 : index
    %c0_7 = arith.constant 0 : index
    %7 = vector.load %arg6[%c0_6, %c0_7] : memref<128x256xbf16, #tpu.memory_space<vmem>>, vector<128x256xbf16>
    %cst_8 = arith.constant dense<0.000000e+00> : vector<128x256xf32>
    %8 = tpu.matmul %6, %7, %cst_8 {dimension_numbers = #tpu.dot_dimension_numbers<[1], [0], [0], [1], [0, 0, 1, 1], [], []>} : vector<128x128xbf16>, vector<128x256xbf16>, vector<128x256xf32> -> vector<128x256xf32>
    %9 = arith.addf %5, %8 : vector<128x256xf32>
    %c0_9 = arith.constant 0 : index
    %c0_10 = arith.constant 0 : index
    %10 = vector.load %arg4[%c0_9, %c0_10] : memref<1x256xf32, #tpu.memory_space<vmem>>, vector<1x256xf32>
    %11 = vector.broadcast %10 : vector<1x256xf32> to vector<128x256xf32>
    %12 = arith.addf %9, %11 : vector<128x256xf32>
    %c0_11 = arith.constant 0 : index
    %c0_12 = arith.constant 0 : index
    %13 = vector.load %arg7[%c0_11, %c0_12] : memref<128x256xf32, #tpu.memory_space<vmem>>, vector<128x256xf32>
    tpu.vector_store %arg7[%c0_11, %c0_12], %12 {strides = array<i32>} : memref<128x256xf32, #tpu.memory_space<vmem>>, vector<128x256xf32>,
    return
  }
  func.func @transform_0(%arg0: i32, %arg1: i32) -> (i32, i32) {
    %c0_i32 = arith.constant 0 : i32
    %c0_i32_0 = arith.constant 0 : i32
    return %arg0, %c0_i32 : i32, i32
  }
  func.func @transform_1(%arg0: i32, %arg1: i32) -> (i32, i32) {
    %c0_i32 = arith.constant 0 : i32
    %c0_i32_0 = arith.constant 0 : i32
    return %c0_i32, %arg1 : i32, i32
  }
  func.func @transform_2(%arg0: i32, %arg1: i32) -> (i32, i32) {
    %c0_i32 = arith.constant 0 : i32
    %c0_i32_0 = arith.constant 0 : i32
    return %c0_i32, %arg1 : i32, i32
  }
  func.func @transform_3(%arg0: i32, %arg1: i32) -> (i32, i32) {
    %c0_i32 = arith.constant 0 : i32
    %c0_i32_0 = arith.constant 0 : i32
    %c0_i32_1 = arith.constant 0 : i32
    return %c0_i32, %c0_i32_0 : i32, i32
  }
  func.func @transform_4(%arg0: i32, %arg1: i32) -> (i32, i32) {
    %c0_i32 = arith.constant 0 : i32
    %c0_i32_0 = arith.constant 0 : i32
    return %c0_i32, %arg1 : i32, i32
  }
  func.func @transform_5(%arg0: i32, %arg1: i32) -> (i32, i32) {
    %c0_i32 = arith.constant 0 : i32
    return %arg0, %arg1 : i32, i32
  }
}

</mosaic_0001>

<bundles_post_ra>
// kernel: tpu_custom_call.1
= control target key start
LH: loop header
LB: loop body
LE: loop exit
PB: predicated region body
PF: predicated region fallthrough
CT: control target
= control target key end

     0   :  { %s2673_s0 = inlined_call_operand.hbm [shape: bf16[256,128], index: 0, kind: input, shape index: {}]   ;;  %s2674_s1 = inlined_call_operand.hbm [shape: bf16[128,512], index: 1, kind: input, shape index: {}]   ;;  %s2675_s2 = inlined_call_operand.vmem [shape: f32[1,512], index: 2, kind: input, shape index: {}]   ;;  %s2676_s3 = inlined_call_operand.hbm [shape: bf16[128,128], index: 3, kind: input, shape index: {}]   ;;  %s2677_s4 = inlined_call_operand.hbm [shape: bf16[128,512], index: 4, kind: input, shape index: {}]   ;;  %s2678_s5 = inlined_call_operand.hbm [shape: f32[256,512], index: 5, kind: output, shape index: {}]  }
   0x1   :  { %2698 = sst [smem:[#allocation27_spill]] %s2673_s0 }
   0x2   :  { %2699 = sst [smem:[#allocation28_spill]] %s2674_s1 }
   0x3   :  { %2700 = sst [smem:[#allocation29_spill]] %s2675_s2 }
   0x4   :  { %2701 = sst [smem:[#allocation30_spill]] %s2676_s3 }
   0x5   :  { %2702 = sst [smem:[#allocation31_spill]] %s2678_s5 }
   0x6   :  { %10 = vsyncpa [#allocation4], 0 }
   0x7   :  { %12 = vsyncpa [#allocation4 + $0x1], 0 }
   0x8   :  { %13 = vsyncpa [#allocation7], 0 }
   0x9   :  { %15 = vsyncpa [#allocation7 + $0x1], 0 }
   0xa   :  { %16 = vsyncpa [#allocation10], 0 }
   0xb   :  { %18 = vsyncpa [#allocation10 + $0x1], 0 }
   0xc   :  { %19 = vsyncpa [#allocation5], 0 }
   0xd   :  { %21 = vsyncpa [#allocation5 + $0x1], 0  ;;  %s2090_s18 = smov 0   ;;  %s2092_s19 = smov 0  }
   0xe   :  { %s2094_s20 = smov 0   ;;  %s2096_s21 = smov 0  }
   0xf   :  { %s2098_s22 = smov 0   ;;  %s2100_s23 = smov 0  }
  0x10   :  { %s2102_s24 = smov 0   ;;  %s2104_s25 = smov 0  }
  0x11   :  { %s2106_s26 = smov 0   ;;  %s2108_s27 = smov 0  }
  0x12   :  { %s2110_s28 = smov 0   ;;  %s2112_s29 = smov 0  }
  0x13   :  { %s2114_s30 = smov 0   ;;  %s2116_s6 = smov 0  }
  0x14 LB: > { %2703 = sst [smem:[#allocation17_spill]] %s1992_s18  ;;  %s2157_s7 = sadd.s32 4294967295, %s2044_s6   ;;  %s2044_s6 = sphi %s2116_s6, %s27_s6   ;;  %s2040_s30 = sphi %s2114_s30, %s2754_s30   ;;  %s2036_s29 = sphi %s2112_s29, %s2764_s29   ;;  %s2032_s28 = sphi %s2110_s28, %s2752_s28   ;;  %s2028_s27 = sphi %s2108_s27, %s2763_s27   ;;  %s2024_s26 = sphi %s2106_s26, %s2762_s26   ;;  %s2020_s25 = sphi %s2104_s25, %s2761_s25   ;;  %s2016_s24 = sphi %s2102_s24, %s2760_s24   ;;  %s2012_s23 = sphi %s2100_s23, %s2759_s23   ;;  %s2008_s22 = sphi %s2098_s22, %s2758_s22   ;;  %s2004_s21 = sphi %s2096_s21, %s2757_s21   ;;  %s2000_s20 = sphi %s2094_s20, %s2756_s20   ;;  %s1996_s19 = sphi %s2092_s19, %s2755_s19   ;;  %s1992_s18 = sphi %s2090_s18, %s2749_s18  }
  0x15   : > { %2704 = sst [smem:[#allocation18_spill]] %s1996_s19  ;;  %s1356_s8 = sadd.s32 4294967294, %s2044_s6  }
  0x16   : > { %2705 = sst [smem:[#allocation19_spill]] %s2028_s27  ;;  %p59_p0 = scmp.ne.s32.totalorder %s2020_s25, %s2016_s24 }
  0x17   : > { %2706 = sst [smem:[#allocation20_spill]] %s2032_s28  ;;  %p2682_p1 = scmp.eq.s32.totalorder %s2157_s7, 0 }
  0x18   : > { %2707 = sst [smem:[#allocation21_spill]] %s2040_s30  ;;  %p85_p3 = scmp.ne.s32.totalorder %s2008_s22, %s2004_s21 }
  0x19   : > { %p2167_p4 = por %p2682_p1, %p59_p0  ;;  %p183_p5 = scmp.ne.s32.totalorder %s2000_s20, %s1996_s19 }
  0x1a   : > { %p2175_p6 = por %p85_p3, %p2682_p1  ;;  %p184_p7 = scmp.eq.s32.totalorder %s2157_s7, 3 }
  0x1b   : > { %s2708_s9 = scalar_select %p2167_p4, 1, 0 }
  0x1c   : > { %s2709_s10 = scalar_select %p2175_p6, 1, 0 }
  0x1d   : > { %p189_p8 = scmp.ne.s32.totalorder %s1996_s19, %s1992_s18  ;;  %p190_p9 = scmp.eq.s32.totalorder %s1356_s8, 3 }
  0x1e   : > { %p2182_p10 = por %p184_p7, %p183_p5  ;;  %p1357_p11 = scmp.ge.s32.totalorder %s2044_s6, 1 }
  0x1f   : > { %p2187_p12 = por %p190_p9, %p189_p8  ;;  %p197_p13 = scmp.lt.s32.totalorder %s2044_s6, 5 }
  0x20   : > { %s2710_s11 = scalar_select %p2182_p10, 1, 0 }
  0x21   : > { %s2712_s12 = scalar_select %p2187_p12, 1, 0 }
  0x22   : > { %2711 = sst [smem:[#allocation22_spill]] %s2710_s11  ;;  %p2192_p0 = pnand %p1357_p11, %p197_p13 }
  0x23   : > { %2713 = sst [smem:[#allocation23_spill]] %s2712_s12  ;;  %s2046_s14 = smov [#allocation8]  }
  0x24   : > { %s2714_s13 = scalar_select %p2192_p0, 1, 0 }
  0x25   : > { %s209_s15 = sshll.u32 %s2046_s14, 4  ;;  %p1552_p3 = pneg %p2192_p0  ;;  %s210_s15 = int_to_ptr.vmem [resolvable:$true] %s209_s15 }
  0x26   : > { %s2716_s3 = sld [smem:[#allocation30_spill]] }
  0x27   : > { %p2200_p5 = pnand %p1552_p3, %p2682_p1 }
  0x29   : > { %p1770_p8 = pneg %p2200_p5 }
  0x2c   : > { %s1768_s24 = scalar_lea.hbm %s2716_s3, 1024 }
  0x2d   : > { %p1769_p7 = scmp.ne.s32.totalorder %s2716_s3, %s1768_s24  ;;  %p1775_p13 = scmp.lt.u32.totalorder %s1768_s24, %s2716_s3 }
  0x2f   : > { %p1771_p9 = pnand %p1770_p8, %p1769_p7 }
  0x31   : > { %p1772_p11 = pneg %p1771_p9 }
  0x33   : > { %p1777_p3 = pnand %p1775_p13, %p1772_p11 }
  0x35   : > { %1780 = shalt.err (!%p1777_p3)
}
  0x36   : > { %s1781_s5 = scalar_lea.vmem %s210_s15, 1024  ;;  %p1789_p10 = scmp.lt.s32.totalorder %s210_s15, %s210_s15 }
  0x37   : > { %p1782_p1 = scmp.ne.s32.totalorder %s210_s15, %s1781_s5  ;;  %p1790_p6 = scmp.lt.s32.totalorder %s1781_s5, %s1781_s5 }
  0x39   : > { %p1784_p2 = pnand %p1782_p1, %p1770_p8  ;;  %p1791_p4 = por %p1790_p6, %p1789_p10 }
  0x3b   : > { %p1785_p12 = pneg %p1784_p2 }
  0x3d   : > { %p1792_p0 = pnand %p1791_p4, %p1785_p12 }
  0x3f   : > { %1795 = shalt.err (!%p1792_p0)
}
  0x40   : > { %s2687_s12 = smov 64   ;;  %s2688_s18 = smov 4  }
  0x41   : > { %1555 = dma.hbm_to_vmem [thread:$0]  (!%p2200_p5), %s2716_s3, 1024, %s210_s15, [#allocation7], %s2687_s12, %s2687_s12, %s2688_s18  }
  0x42   : > { %s36_s21 = sadd.s32 1, %s2036_s29  ;;  %s39_s24 = sadd.s32 1, %s2040_s30 }
  0x43   : > { %p37_p1 = scmp.ge.s32.totalorder %s36_s21, 2  ;;  %s46_s8 = sadd.s32 1, %s2024_s26 }
  0x44   : > { %p53_p2 = scmp.ne.s32.totalorder %s2024_s26, %s2020_s25  ;;  %p54_p4 = scmp.eq.s32.totalorder %s2044_s6, 0 }
  0x45   : > { %s2766_s21 = smov (%p37_p1, %s36_s21), 0  ;;  %s2768_s24 = smov (!%p37_p1, %s39_s24), %s2040_s30 }
  0x46   : > { %2717 = sst [smem:[#allocation24_spill]] %s2766_s21  ;;  %s69_s16 = ssub.s32 %s2036_s29, %s2766_s21 }
  0x47   : > { %p41_p6 = scmp.ge.s32.totalorder %s2768_s24, 2  ;;  %p70_p10 = scmp.eq.s32.totalorder %s69_s16, 0 }
  0x48   : > { %p2234_p12 = por %p54_p4, %p53_p2  ;;  %s72_s14 = sadd.s32 1, %s2012_s23 }
  0x49   : > { %s2770_s24 = smov (%p41_p6, %s2768_s24), 0  ;;  %p2721_p0 = scmp.ne.s32.totalorder %s2012_s23, %s2008_s22 }
  0x4a   : > { %2719 = sst [smem:[#allocation25_spill]] %s2770_s24  ;;  %s43_s17 = ssub.s32 %s2040_s30, %s2770_s24 }
  0x4b   : > { %s2242_s5 = scalar_select %p70_p10, %s2012_s23, %s72_s14  }
  0x4c   : > { %p2249_p5 = por %p2721_p0, %p54_p4  ;;  %p44_p7 = scmp.eq.s32.totalorder %s43_s17, 0 }
  0x4d   : > { %2720 = sst [smem:[#allocation26_spill]] %s2242_s5  ;;  %s170_s18 = sor.u32 %s69_s16, %s43_s17 }
  0x4e   : > { %p171_p8 = scmp.eq.s32.totalorder %s170_s18, 0  ;;  %s173_s3 = sadd.s32 1, %s2000_s20 }
  0x4f   : > { %s2255_s21 = scalar_select %p44_p7, %s2024_s26, %s46_s8  }
  0x50   : > { %s2258_s11 = scalar_select %p171_p8, %s2000_s20, %s173_s3  }
  0x51   : > { %p1571_p9 = scmp.lt.s32.totalorder %s2044_s6, 4  ;;  %s223_s14 = sand.u32 1, %s2024_s26  }
  0x52   : > { %s1360_s5 = sshll.u32 %s223_s14, 6  ;;  %s1440_s24 = sshll.u32 %s2040_s30, 10 }
  0x53   : > { %s2723_s0 = sld [smem:[#allocation27_spill]]  ;;  %s227_s19 = scalar_lea.vmem [#allocation3], %s1360_s5 }
  0x54   : > { %s234_s18 = sshll.u32 %s227_s19, 4  ;;  %p2272_p11 = pnand %p1571_p9, %p2234_p12  ;;  %s2268_s18 = int_to_ptr.vmem [resolvable:$true] %s234_s18 }
  0x55   : > { %p2278_p13 = pnand %p1571_p9, %p2249_p5 }
  0x56   : > { %p1798_p1 = pneg %p2272_p11 }
  0x59   : > { %s2266_s27 = scalar_lea.hbm %s2723_s0, %s1440_s24  ;;  %s2283_s24 = scalar_lea.sflag [#allocation4], %s223_s14 }
  0x5a   : > { %s1796_s8 = scalar_lea.hbm %s2266_s27, 1024  ;;  %s1801_s12 = scalar_lea.hbm %s2723_s0, 2048 }
  0x5b   : > { %p1797_p3 = scmp.ne.s32.totalorder %s2266_s27, %s1796_s8  ;;  %p1802_p6 = scmp.lt.u32.totalorder %s2266_s27, %s2723_s0 }
  0x5c   : > { %p1803_p10 = scmp.lt.u32.totalorder %s1801_s12, %s1796_s8  ;;  %p1805_p0 = scmp.lt.u32.totalorder %s1796_s8, %s2266_s27 }
  0x5d   : > { %p1799_p2 = pnand %p1798_p1, %p1797_p3 }
  0x5e   : > { %p1804_p12 = por %p1803_p10, %p1802_p6 }
  0x5f   : > { %p1800_p4 = pneg %p1799_p2 }
  0x60   : > { %p1806_p5 = por %p1805_p0, %p1804_p12 }
  0x62   : > { %p1807_p7 = pnand %p1806_p5, %p1800_p4 }
  0x64   : > { %1810 = shalt.err (!%p1807_p7)
}
  0x65   : > { %s1811_s17 = scalar_lea.vmem %s2268_s18, 1024  ;;  %s2049_s14 = smov [#allocation3]  }
  0x66   : > { %p1812_p8 = scmp.ne.s32.totalorder %s2268_s18, %s1811_s17  ;;  %s1816_s19 = sshll.u32 %s2049_s14, 4  ;;  %s1817_s19 = int_to_ptr.vmem [resolvable:$false] %s1816_s19 }
  0x67   : > { %s1818_s16 = scalar_lea.vmem %s1817_s19, 2048  ;;  %p1819_p2 = scmp.lt.s32.totalorder %s2268_s18, %s1817_s19 }
  0x68   : > { %p1814_p9 = pnand %p1812_p8, %p1798_p1  ;;  %p1820_p6 = scmp.lt.s32.totalorder %s1818_s16, %s1811_s17 }
  0x6a   : > { %p1815_p3 = pneg %p1814_p9  ;;  %p1821_p10 = por %p1820_p6, %p1819_p2 }
  0x6c   : > { %p1822_p12 = pnand %p1821_p10, %p1815_p3 }
  0x6e   : > { %1825 = shalt.err (!%p1822_p12)
}
  0x6f   : > { %s2726_s8 = smov 4   ;;  %s2727_s12 = smov 64  }
  0x70   : > { %1559 = dma.hbm_to_vmem [thread:$0]  (!%p2272_p11), %s2266_s27, 1024, %s2268_s18, %s2283_s24, %s2727_s12, %s2727_s12, %s2726_s8  }
  0x71   : > { %s2696_s15 = sand.u32 1, %s2012_s23   ;;  %s1441_s3 = sshll.u32 %s2036_s29, 7 }
  0x72   : > { %s2317_s5 = sshll.u32 %s2696_s15, 7  ;;  %s2728_s1 = sld [smem:[#allocation28_spill]] }
  0x73   : > { %s248_s16 = scalar_lea.vmem [#allocation6], %s2317_s5  ;;  %s2729_s27 = sand.u32 1, %s2044_s6  }
  0x74   : > { %s255_s28 = sshll.u32 %s248_s16, 4  ;;  %s2332_s18 = scalar_lea.sflag [#allocation7], %s2729_s27  ;;  %s2328_s28 = int_to_ptr.vmem [resolvable:$true] %s255_s28 }
  0x75   : > { %p1828_p1 = pneg %p2278_p13 }
  0x78   : > { %s2325_s19 = scalar_lea.hbm %s2728_s1, %s1441_s3  ;;  %s1831_s17 = scalar_lea.hbm %s2728_s1, 4096 }
  0x79   : > { %s1826_s24 = scalar_lea.hbm %s2325_s19, 2048  ;;  %p1832_p5 = scmp.lt.u32.totalorder %s2325_s19, %s2728_s1 }
  0x7a   : > { %p1827_p11 = scmp.ne.s32.totalorder %s2325_s19, %s1826_s24  ;;  %p1833_p7 = scmp.lt.u32.totalorder %s1831_s17, %s1826_s24 }
  0x7b   : > { %p1835_p9 = scmp.lt.u32.totalorder %s1826_s24, %s2325_s19 }
  0x7c   : > { %p1829_p4 = pnand %p1828_p1, %p1827_p11  ;;  %p1834_p8 = por %p1833_p7, %p1832_p5 }
  0x7e   : > { %p1830_p0 = pneg %p1829_p4  ;;  %p1836_p3 = por %p1835_p9, %p1834_p8 }
  0x80   : > { %p1837_p2 = pnand %p1836_p3, %p1830_p0 }
  0x82   : > { %1840 = shalt.err (!%p1837_p2)
}
  0x83   : > { %s1841_s16 = scalar_lea.vmem %s2328_s28, 2048  ;;  %s2050_s27 = smov [#allocation6]  }
  0x84   : > { %p1842_p6 = scmp.ne.s32.totalorder %s2328_s28, %s1841_s16  ;;  %s1846_s8 = sshll.u32 %s2050_s27, 4  ;;  %s1847_s8 = int_to_ptr.vmem [resolvable:$false] %s1846_s8 }
  0x85   : > { %s1848_s15 = scalar_lea.vmem %s1847_s8, 4096  ;;  %p1849_p11 = scmp.lt.s32.totalorder %s2328_s28, %s1847_s8 }
  0x86   : > { %p1844_p10 = pnand %p1842_p6, %p1828_p1  ;;  %p1850_p4 = scmp.lt.s32.totalorder %s1848_s15, %s1841_s16 }
  0x88   : > { %p1845_p12 = pneg %p1844_p10  ;;  %p1851_p5 = por %p1850_p4, %p1849_p11 }
  0x8a   : > { %p1852_p7 = pnand %p1851_p5, %p1845_p12 }
  0x8c   : > { %1855 = shalt.err (!%p1852_p7)
}
  0x8d   : > { %s2051_s24 = smov 256   ;;  %s2052_s12 = smov 128  }
  0x8e   : > { %s2053_s17 = smov 8   ;;  %s2368_s27 = scalar_lea.hbm %s2677_s4, %s1441_s3 }
  0x8f   : > { %1562 = dma.hbm_to_vmem [thread:$0]  (!%p2278_p13), %s2325_s19, 2048, %s2328_s28, %s2332_s18, %s2051_s24, %s2052_s12, %s2053_s17  }
  0x90   : > { %s277_s8 = scalar_lea.vmem [#allocation9], %s2317_s5  ;;  %s2730_s0 = sand.u32 1, %s2012_s23  }
  0x91   : > { %s284_s15 = sshll.u32 %s277_s8, 4  ;;  %s2375_s1 = scalar_lea.sflag [#allocation10], %s2730_s0  ;;  %s2371_s15 = int_to_ptr.vmem [resolvable:$true] %s284_s15 }
  0x92   : > { %s1856_s30 = scalar_lea.hbm %s2368_s27, 2048  ;;  %s1861_s19 = scalar_lea.hbm %s2677_s4, 4096 }
  0x93   : > { %p1857_p0 = scmp.ne.s32.totalorder %s2368_s27, %s1856_s30  ;;  %p1862_p3 = scmp.lt.u32.totalorder %s2368_s27, %s2677_s4 }
  0x94   : > { %p1863_p2 = scmp.lt.u32.totalorder %s1861_s19, %s1856_s30  ;;  %p1865_p10 = scmp.lt.u32.totalorder %s1856_s30, %s2368_s27 }
  0x95   : > { %p1859_p8 = pnand %p1857_p0, %p1828_p1 }
  0x96   : > { %p1864_p6 = por %p1863_p2, %p1862_p3 }
  0x97   : > { %p1860_p9 = pneg %p1859_p8 }
  0x98   : > { %p1866_p12 = por %p1865_p10, %p1864_p6 }
  0x9a   : > { %p1867_p11 = pnand %p1866_p12, %p1860_p9 }
  0x9c   : > { %1870 = shalt.err (!%p1867_p11)
}
  0x9d   : > { %s1871_s0 = scalar_lea.vmem %s2371_s15, 2048  ;;  %s2054_s5 = smov [#allocation9]  }
  0x9e   : > { %p1872_p4 = scmp.ne.s32.totalorder %s2371_s15, %s1871_s0  ;;  %s1876_s16 = sshll.u32 %s2054_s5, 4  ;;  %s1877_s16 = int_to_ptr.vmem [resolvable:$false] %s1876_s16 }
  0x9f   : > { %s1878_s8 = scalar_lea.vmem %s1877_s16, 4096  ;;  %p1879_p0 = scmp.lt.s32.totalorder %s2371_s15, %s1877_s16 }
  0xa0   : > { %p1874_p5 = pnand %p1872_p4, %p1828_p1  ;;  %p1880_p8 = scmp.lt.s32.totalorder %s1878_s8, %s1871_s0 }
  0xa2   : > { %p1875_p7 = pneg %p1874_p5  ;;  %p1881_p3 = por %p1880_p8, %p1879_p0 }
  0xa4   : > { %p1882_p2 = pnand %p1881_p3, %p1875_p7 }
  0xa6   : > { %1885 = shalt.err (!%p1882_p2)
}
  0xa7   : > { %1565 = dma.hbm_to_vmem [thread:$0]  (!%p2278_p13), %s2368_s27, 2048, %s2371_s15, %s2375_s1, %s2051_s24, %s2052_s12, %s2053_s17  }
  0xa8   : > { %p2731_p1 = scmp.ne.s32.totalorder %s2714_s13, 0 }
  0xa9   : > { %s298_s30 = sand.u32 (!%p2731_p1), 1, %s2020_s25   ;;  %p2732_p9 = scmp.ne.s32.totalorder (!%p2731_p1), %s2708_s9, 0 }
  0xaa   : > { %296 = sbr.rel (%p2731_p1) target bundleno = 783 (0x30f), region = 40  ;;  %s1370_s28 = sshll.u32 (!%p2731_p1), %s298_s30, 6 }
  0xab   : > { %s299_s3 = scalar_lea.sflag (!%p2731_p1), [#allocation4], %s298_s30  ;;  %s2407_s19 = scalar_lea.vmem (!%p2731_p1), [#allocation3], %s1370_s28 }
  0xb1   : > { %1971 = dma.done.wait (%p2732_p9), %s299_s3, 1024  }
  0xb2   : > { %1973 = vsyncadd (%p2732_p9), %s299_s3, 4294966272  ;;  %s307_s2 = sand.u32 1, %s2157_s7   ;;  %s309_s1 = sand.u32 1, %s2008_s22  }
  0xb3   : > { %s1371_s24 = sshll.u32 %s309_s1, 7  ;;  %s308_s13 = scalar_lea.sflag [#allocation7], %s307_s2 }
  0xb4   : > { %s2415_s12 = scalar_lea.vmem [#allocation6], %s1371_s24  ;;  %p2733_p13 = scmp.ne.s32.totalorder %s2709_s10, 0 }
  0xb6   : > { %1975 = dma.done.wait (%p2733_p13), %s308_s13, 2048  }
  0xb7   : > { %1977 = vsyncadd (%p2733_p13), %s308_s13, 4294965248  ;;  %p2734_p6 = scmp.eq.s32.totalorder %s2157_s7, 0 }
  0xb9   : > { %1979 = dma.done.wait (%p2734_p6), [#allocation7], 1024   ;;  %p2735_p10 = pmov %p2734_p6 }
  0xba   : > { %s321_s9 = scalar_lea.sflag [#allocation10], %s309_s1  ;;  %s2425_s17 = scalar_lea.vmem [#allocation9], %s1371_s24 }
  0xbb   : > { %1981 = vsyncadd (%p2735_p10), [#allocation7], 4294966272 }
  0xbc   : > { %1983 = dma.done.wait (%p2733_p13), %s321_s9, 2048  }
  0xbd   : > { %1985 = vsyncadd (%p2733_p13), %s321_s9, 4294965248  ;;  %s2736_s27 = sld [smem:[#allocation18_spill]]  ;;  %s2737_s15 = sld [smem:[#allocation19_spill]] }
  0xbe   : > { %s2738_s8 = sld [smem:[#allocation29_spill]] }
  0xc3   : > { %s362_s18 = sand.u32 1, %s2736_s27   ;;  %s2433_s14 = sshll.u32 %s2737_s15, 1 }
  0xc4   : > { %s1374_s7 = sshll.u32 %s362_s18, 8  ;;  %p368_p12 = scmp.lt.s32.totalorder %s2433_s14, 3 }
  0xc5   : > { %s2445_s10 = scalar_lea.vmem [#allocation11], %s1374_s7  ;;  %p1376_p11 = scmp.ne.s32.totalorder %s2737_s15, 0 }
  0xc6   : > { %s2439_s0 = scalar_select %p368_p12, %s2433_s14, 3 }
  0xc7   : > { %379 = sbr.rel (%p1376_p11) target bundleno = 458 (0x1ca), region = 60  ;;  %v1696_v0 = vld [vmem:[#allocation8] sm:$0xff] (!%p1376_p11)   ;;  %v1697_v1 = vld [vmem:[#allocation8 + $0x8] sm:$0xff] (!%p1376_p11)   ;;  %v1698_v2 = vld [vmem:[#allocation8 + $0x10] sm:$0xff] (!%p1376_p11)  }
  0xc8   : > { %s370_s30 = scalar_lea.vmem %s2738_s8, %s2439_s0  ;;  %1460 = vmatprep.subr.bf16.mxu0 (!%p1376_p11), %v1696_v0  ;;  %1492 = vmatprep.subr.bf16.mxu1 (!%p1376_p11), %v1696_v0  ;;  %v1699_v3 = vld [vmem:[#allocation8 + $0x18] sm:$0xff] (!%p1376_p11)   ;;  %v1704_v4 = vld [vmem:[%s2407_s19] sm:$0xff] (!%p1376_p11)   ;;  %v1701_v7 = vld [vmem:[#allocation8 + $0x28] sm:$0xff] (!%p1376_p11)  }
  0xc9   : > { %1461 = vmatpush3.bf16.msra.mxu0 (!%p1376_p11), %v1696_v0  ;;  %1500 = vmatpush3.bf16.msra.mxu1 (!%p1376_p11), %v1696_v0  ;;  %v1705_v5 = vld [vmem:[%s2407_s19 + $0x20] sm:$0xff] (!%p1376_p11)   ;;  %v1702_v8 = vld [vmem:[#allocation8 + $0x30] sm:$0xff] (!%p1376_p11)   ;;  %v1703_v9 = vld [vmem:[#allocation8 + $0x38] sm:$0xff] (!%p1376_p11)  }
  0xca   : > { %1462 = vmatprep.subr.bf16.mxu0 (!%p1376_p11), %v1697_v1  ;;  %1493 = vmatprep.subr.bf16.mxu1 (!%p1376_p11), %v1697_v1  ;;  %v1700_v6 = vld [vmem:[#allocation8 + $0x20] sm:$0xff] (!%p1376_p11)   ;;  %v1706_v10 = vld [vmem:[%s2407_s19 + $0x8] sm:$0xff] (!%p1376_p11)   ;;  %v1708_v12 = vld [vmem:[%s2407_s19 + $0x10] sm:$0xff] (!%p1376_p11)  }
  0xcb   : > { %1476 = vmatprep.mubr.bf16.mxu0 (!%p1376_p11), %v1704_v4  ;;  %1484 = vmatprep.mubr.bf16.mxu1 (!%p1376_p11), %v1705_v5  ;;  %v1707_v11 = vld [vmem:[%s2407_s19 + $0x28] sm:$0xff] (!%p1376_p11)   ;;  %v1709_v13 = vld [vmem:[%s2407_s19 + $0x30] sm:$0xff] (!%p1376_p11)   ;;  %v1710_v14 = vld [vmem:[%s2407_s19 + $0x18] sm:$0xff] (!%p1376_p11)  }
  0xcc   : > { %v1711_v15 = vld [vmem:[%s2407_s19 + $0x38] sm:$0xff] (!%p1376_p11)  }
  0xcd   : > { %1463 = vmatpush3.bf16.msra.mxu0 (!%p1376_p11), %v1697_v1  ;;  %1501 = vmatpush3.bf16.msra.mxu1 (!%p1376_p11), %v1697_v1 }
  0xce   : > { %1464 = vmatprep.subr.bf16.mxu0 %v1698_v2  ;;  %1494 = vmatprep.subr.bf16.mxu1 %v1698_v2 }
  0xd1   : > { %1465 = vmatpush3.bf16.msra.mxu0 %v1698_v2  ;;  %1502 = vmatpush3.bf16.msra.mxu1 %v1698_v2 }
  0xd2   : > { %1466 = vmatprep.subr.bf16.mxu0 %v1699_v3  ;;  %1495 = vmatprep.subr.bf16.mxu1 %v1699_v3 }
  0xd5   : > { %1467 = vmatpush3.bf16.msra.mxu0 %v1699_v3  ;;  %1503 = vmatpush3.bf16.msra.mxu1 %v1699_v3 }
  0xd6   : > { %1468 = vmatprep.subr.bf16.mxu0 %v1700_v6  ;;  %1496 = vmatprep.subr.bf16.mxu1 %v1700_v6 }
  0xd9   : > { %1469 = vmatpush3.bf16.msra.mxu0 %v1700_v6  ;;  %1504 = vmatpush3.bf16.msra.mxu1 %v1700_v6 }
  0xda   : > { %1470 = vmatprep.subr.bf16.mxu0 %v1701_v7  ;;  %1497 = vmatprep.subr.bf16.mxu1 %v1701_v7 }
  0xdd   : > { %1471 = vmatpush3.bf16.msra.mxu0 %v1701_v7  ;;  %1505 = vmatpush3.bf16.msra.mxu1 %v1701_v7 }
  0xde   : > { %1472 = vmatprep.subr.bf16.mxu0 %v1702_v8  ;;  %1498 = vmatprep.subr.bf16.mxu1 %v1702_v8 }
  0xe1   : > { %1473 = vmatpush3.bf16.msra.mxu0 %v1702_v8  ;;  %1506 = vmatpush3.bf16.msra.mxu1 %v1702_v8 }
  0xe2   : > { %1474 = vmatprep.subr.bf16.mxu0 %v1703_v9  ;;  %1499 = vmatprep.subr.bf16.mxu1 %v1703_v9 }
  0xe5   : > { %1475 = vmatpush3.bf16.msra.mxu0 %v1703_v9  ;;  %1507 = vmatpush3.bf16.msra.mxu1 %v1703_v9 }
  0xe8   : > { %1477 = vmatmul.mubr.bf16.vlgmr.msra.gmra.mrb[0].mxu0 %v1706_v10  ;;  %1485 = vmatmul.mubr.bf16.vlgmr.msra.gmra.mrb[0].mxu1 %v1707_v11 }
  0xe9   : > { %1480 = vmatprep.mubr.bf16.mxu0 %v1708_v12  ;;  %1488 = vmatprep.mubr.bf16.mxu1 %v1709_v13 }
  0xf0   : > { %1481 = vmatmul.mubr.bf16.gmra.mrb[4].mxu0 %v1710_v14  ;;  %1489 = vmatmul.mubr.bf16.gmra.mrb[4].mxu1 %v1711_v15 }
 0x1bb   : > { %v1478_v16 = vpop.f32.mrb[0].mxu0  ;;  %v1486_v17 = vpop.f32.mrb[0].mxu1 }
 0x1bc   : > { %v542_v18 = vpop.f32.mrb[1].mxu0  ;;  %v574_v19 = vpop.f32.mrb[1].mxu1 }
 0x1bd   : > { %v1479_v20 = vpop.f32.mrb[2].mxu0  ;;  %v1487_v21 = vpop.f32.mrb[2].mxu1 }
 0x1be   : > { %v606_v22 = vpack.c.bf16 %v1479_v20, %v1478_v16  ;;  %v610_v23 = vpack.c.bf16 %v1487_v21, %v1486_v17  ;;  %v545_v24 = vpop.f32.mrb[3].mxu0  ;;  %v577_v25 = vpop.f32.mrb[3].mxu1 }
 0x1bf   : > { %v605_v26 = vpack.c.bf16 %v545_v24, %v542_v18  ;;  %v609_v27 = vpack.c.bf16 %v577_v25, %v574_v19 }
 0x1c0   : > { %614 = vst [vmem:[#allocation2 + $0x8] sm:$0xff] %v606_v22  ;;  %618 = vst [vmem:[#allocation2 + $0x28] sm:$0xff] %v610_v23 }
 0x1c1   : > { %613 = vst [vmem:[#allocation2] sm:$0xff] %v605_v26  ;;  %617 = vst [vmem:[#allocation2 + $0x20] sm:$0xff] %v609_v27 }
 0x1c3   : > { %v1482_v28 = vpop.f32.mrb[4].mxu0  ;;  %v1490_v29 = vpop.f32.mrb[4].mxu1 }
 0x1c4   : > { %v558_v30 = vpop.f32.mrb[5].mxu0  ;;  %v590_v31 = vpop.f32.mrb[5].mxu1 }
 0x1c5   : > { %v1483_v32 = vpop.f32.mrb[6].mxu0  ;;  %v1491_v33 = vpop.f32.mrb[6].mxu1 }
 0x1c6   : > { %v608_v34 = vpack.c.bf16 %v1483_v32, %v1482_v28  ;;  %v612_v35 = vpack.c.bf16 %v1491_v33, %v1490_v29  ;;  %v561_v36 = vpop.f32.mrb[7].mxu0  ;;  %v593_v37 = vpop.f32.mrb[7].mxu1 }
 0x1c7   : > { %v607_v38 = vpack.c.bf16 %v561_v36, %v558_v30  ;;  %v611_v39 = vpack.c.bf16 %v593_v37, %v590_v31 }
 0x1c8   : > { %616 = vst [vmem:[#allocation2 + $0x18] sm:$0xff] %v608_v34  ;;  %620 = vst [vmem:[#allocation2 + $0x38] sm:$0xff] %v612_v35 }
 0x1c9   : > { %615 = vst [vmem:[#allocation2 + $0x10] sm:$0xff] %v607_v38  ;;  %619 = vst [vmem:[#allocation2 + $0x30] sm:$0xff] %v611_v39 }
 0x1ca PF: > { %v1712_v40 = vld [vmem:[%s2425_s17 + $0x4] ss:$8 sps:$4 sm:$0xff]   ;;  %v2055_v42 = vmov 0   ;;  %v1716_v43 = vld [vmem:[%s2425_s17] ss:$8 sps:$4 sm:$0xff]   ;;  %v1762_v13 = vld [vmem:[%s2407_s19 + $0x10] sm:$0xff]   ;;  %v1113_v25 = vlaneseq }
 0x1cb   : > { %v1714_v41 = vld [vmem:[%s2415_s12 + $0x4] ss:$8 sps:$4 sm:$0xff]   ;;  %789 = vmatprep.mubr.bf16.mxu1 %v2055_v42  ;;  %1030 = vmatprep.mubr.bf16.mxu0 %v2055_v42  ;;  %v1717_v44 = vld [vmem:[%s2415_s12] ss:$8 sps:$4 sm:$0xff]   ;;  %v1718_v45 = vld [vmem:[%s2425_s17 + $0x14] ss:$8 sps:$4 sm:$0xff]  }
 0x1cc   : > { %757 = vmatprep.subr.bf16.mxu1 %v1712_v40  ;;  %998 = vmatprep.subr.bf16.mxu0 %v1714_v41  ;;  %v1720_v46 = vld [vmem:[%s2415_s12 + $0x14] ss:$8 sps:$4 sm:$0xff]   ;;  %v1722_v47 = vld [vmem:[%s2425_s17 + $0x10] ss:$8 sps:$4 sm:$0xff]   ;;  %v1724_v49 = vld [vmem:[%s2425_s17 + $0x24] ss:$8 sps:$4 sm:$0xff]  }
 0x1cd   : > { %758 = vmatpush1.bf16.msra.mxu1 %v1716_v43  ;;  %999 = vmatpush1.bf16.msra.mxu0 %v1717_v44  ;;  %v1723_v48 = vld [vmem:[%s2415_s12 + $0x10] ss:$8 sps:$4 sm:$0xff]   ;;  %v1726_v50 = vld [vmem:[%s2415_s12 + $0x24] ss:$8 sps:$4 sm:$0xff]   ;;  %v1728_v51 = vld [vmem:[%s2425_s17 + $0x20] ss:$8 sps:$4 sm:$0xff]  }
 0x1ce   : > { %759 = vmatprep.subr.bf16.mxu1 %v1718_v45  ;;  %1000 = vmatprep.subr.bf16.mxu0 %v1720_v46  ;;  %v1729_v52 = vld [vmem:[%s2415_s12 + $0x20] ss:$8 sps:$4 sm:$0xff]   ;;  %v1730_v53 = vld [vmem:[%s2425_s17 + $0x34] ss:$8 sps:$4 sm:$0xff]   ;;  %v1734_v55 = vld [vmem:[%s2425_s17 + $0x30] ss:$8 sps:$4 sm:$0xff]  }
 0x1cf   : > { %v1732_v54 = vld [vmem:[%s2415_s12 + $0x34] ss:$8 sps:$4 sm:$0xff]   ;;  %v1735_v56 = vld [vmem:[%s2415_s12 + $0x30] ss:$8 sps:$4 sm:$0xff]   ;;  %v1736_v57 = vld [vmem:[%s2425_s17 + $0x44] ss:$8 sps:$4 sm:$0xff]  }
 0x1d0   : > { %v1738_v58 = vld [vmem:[%s2415_s12 + $0x44] ss:$8 sps:$4 sm:$0xff]   ;;  %v1740_v59 = vld [vmem:[%s2425_s17 + $0x40] ss:$8 sps:$4 sm:$0xff]   ;;  %v1742_v61 = vld [vmem:[%s2425_s17 + $0x54] ss:$8 sps:$4 sm:$0xff]  }
 0x1d1   : > { %760 = vmatpush1.bf16.msra.mxu1 %v1722_v47  ;;  %1001 = vmatpush1.bf16.msra.mxu0 %v1723_v48  ;;  %v1741_v60 = vld [vmem:[%s2415_s12 + $0x40] ss:$8 sps:$4 sm:$0xff]   ;;  %v1744_v62 = vld [vmem:[%s2415_s12 + $0x54] ss:$8 sps:$4 sm:$0xff]   ;;  %v1746_v63 = vld [vmem:[%s2425_s17 + $0x50] ss:$8 sps:$4 sm:$0xff]  }
 0x1d2   : > { %761 = vmatprep.subr.bf16.mxu1 %v1724_v49  ;;  %1002 = vmatprep.subr.bf16.mxu0 %v1726_v50  ;;  %v1747_v0 = vld [vmem:[%s2415_s12 + $0x50] ss:$8 sps:$4 sm:$0xff]   ;;  %v1748_v1 = vld [vmem:[%s2425_s17 + $0x64] ss:$8 sps:$4 sm:$0xff]   ;;  %v1752_v3 = vld [vmem:[%s2425_s17 + $0x60] ss:$8 sps:$4 sm:$0xff]  }
 0x1d3   : > { %v1750_v2 = vld [vmem:[%s2415_s12 + $0x64] ss:$8 sps:$4 sm:$0xff]   ;;  %v1753_v4 = vld [vmem:[%s2415_s12 + $0x60] ss:$8 sps:$4 sm:$0xff]   ;;  %v1754_v5 = vld [vmem:[%s2425_s17 + $0x74] ss:$8 sps:$4 sm:$0xff]  }
 0x1d4   : > { %v1756_v6 = vld [vmem:[%s2415_s12 + $0x74] ss:$8 sps:$4 sm:$0xff]   ;;  %v1758_v7 = vld [vmem:[%s2425_s17 + $0x70] ss:$8 sps:$4 sm:$0xff]   ;;  %v1760_v9 = vld [vmem:[%s2407_s19] sm:$0xff]   ;;  %v1114_v26 = vshrl.u32 %v1113_v25, 7 }
 0x1d5   : > { %762 = vmatpush1.bf16.msra.mxu1 %v1728_v51  ;;  %1003 = vmatpush1.bf16.msra.mxu0 %v1729_v52  ;;  %v1759_v8 = vld [vmem:[%s2415_s12 + $0x70] ss:$8 sps:$4 sm:$0xff]   ;;  %v653_v10 = vld [vmem:[#allocation2] sm:$0xff]  ;;  %v1761_v11 = vld [vmem:[%s2407_s19 + $0x8] sm:$0xff]   ;;  %s1204_s9 = sshll.u32 %s2445_s10, 4  ;;  %s2742_s17 = sld [smem:[#allocation22_spill]]  ;;  %s2589_s9 = int_to_ptr.vmem [resolvable:$true] %s1204_s9 }
 0x1d6   : > { %763 = vmatprep.subr.bf16.mxu1 %v1730_v53  ;;  %1004 = vmatprep.subr.bf16.mxu0 %v1732_v54  ;;  %v654_v12 = vld [vmem:[#allocation2 + $0x8] sm:$0xff]  ;;  %v655_v14 = vld [vmem:[#allocation2 + $0x10] sm:$0xff]  ;;  %v1763_v15 = vld [vmem:[%s2407_s19 + $0x18] sm:$0xff]   ;;  %v1115_v27 = vsub.s32 0, %v1114_v26  ;;  %v1119_v29 = vsub.s32 1, %v1114_v26  ;;  %s2597_s0 = scalar_lea.sflag [#allocation5], %s362_s18 }
 0x1d7   : > { %v656_v16 = vld [vmem:[#allocation2 + $0x18] sm:$0xff]  ;;  %v1764_v17 = vld [vmem:[%s2407_s19 + $0x20] sm:$0xff]   ;;  %v1765_v19 = vld [vmem:[%s2407_s19 + $0x28] sm:$0xff]   ;;  %s1886_s5 = scalar_lea.vmem %s2589_s9, 4096  ;;  %s2056_s16 = smov [#allocation11]  }
 0x1d8   : > { %v657_v18 = vld [vmem:[#allocation2 + $0x20] sm:$0xff]  ;;  %v658_v20 = vld [vmem:[#allocation2 + $0x28] sm:$0xff]  ;;  %v1766_v21 = vld [vmem:[%s2407_s19 + $0x30] sm:$0xff]   ;;  %p1887_p4 = scmp.ne.s32.totalorder %s2589_s9, %s1886_s5  ;;  %s1890_s8 = sshll.u32 %s2056_s16, 4  ;;  %s1891_s8 = int_to_ptr.vmem [resolvable:$false] %s1890_s8 }
 0x1d9   : > { %764 = vmatpush1.bf16.msra.mxu1 %v1734_v55  ;;  %1005 = vmatpush1.bf16.msra.mxu0 %v1735_v56  ;;  %v659_v22 = vld [vmem:[#allocation2 + $0x30] sm:$0xff]  ;;  %v1767_v23 = vld [vmem:[%s2407_s19 + $0x38] sm:$0xff]   ;;  %v1111_v28 = vld [vmem:[%s370_s30] sm:$0x3]  ;;  %s2740_s19 = sld [smem:[#allocation20_spill]]  ;;  %s1892_s30 = scalar_lea.vmem %s1891_s8, 8192 }
 0x1da   : > { %765 = vmatprep.subr.bf16.mxu1 %v1736_v57  ;;  %1006 = vmatprep.subr.bf16.mxu0 %v1738_v58  ;;  %v660_v24 = vld [vmem:[#allocation2 + $0x38] sm:$0xff]  ;;  %v2517_v30 = vrot.slane %v1111_v28, %v1115_v27  ;;  %v2519_v33 = vrot.slane %v1111_v28, %v1119_v29  ;;  %p1893_p8 = scmp.lt.s32.totalorder %s2589_s9, %s1891_s8  ;;  %p1894_p3 = scmp.lt.s32.totalorder %s1892_s30, %s1886_s5 }
 0x1db   : > { %p2744_p5 = scmp.ne.s32.totalorder %s2742_s17, 0 }
 0x1dc   : > { %p1895_p2 = por %p1894_p3, %p1893_p8 }
 0x1dd   : > { %766 = vmatpush1.bf16.msra.mxu1 %v1740_v59  ;;  %1007 = vmatpush1.bf16.msra.mxu0 %v1741_v60  ;;  %p1888_p7 = pnand %p1887_p4, %p2744_p5 }
 0x1de   : > { %767 = vmatprep.subr.bf16.mxu1 %v1742_v61  ;;  %1008 = vmatprep.subr.bf16.mxu0 %v1744_v62 }
 0x1df   : > { %s1443_s1 = sshll.u32 %s2740_s19, 6  ;;  %p1889_p0 = pneg %p1888_p7 }
 0x1e0   : > { %s1201_s24 = sadd.s32 %s1443_s1, %s2433_s14  ;;  %s2743_s14 = sld [smem:[#allocation31_spill]] }
 0x1e1   : > { %768 = vmatpush1.bf16.msra.mxu1 %v1746_v63  ;;  %1009 = vmatpush1.bf16.msra.mxu0 %v1747_v0  ;;  %s1437_s13 = sshll.u32 %s1201_s24, 7  ;;  %p1896_p1 = pnand %p1895_p2, %p1889_p0 }
 0x1e2   : > { %769 = vmatprep.subr.bf16.mxu1 %v1748_v1  ;;  %1010 = vmatprep.subr.bf16.mxu0 %v1750_v2 }
 0x1e5   : > { %770 = vmatpush1.bf16.msra.mxu1 %v1752_v3  ;;  %1011 = vmatpush1.bf16.msra.mxu0 %v1753_v4 }
 0x1e6   : > { %771 = vmatprep.subr.bf16.mxu1 %v1754_v5  ;;  %1012 = vmatprep.subr.bf16.mxu0 %v1756_v6  ;;  %s2585_s7 = scalar_lea.hbm %s2743_s14, %s1437_s13 }
 0x1e9   : > { %772 = vmatpush1.bf16.msra.mxu1 %v1758_v7  ;;  %1013 = vmatpush1.bf16.msra.mxu0 %v1759_v8 }
 0x1ec   : > { %790 = vmatmul.mubr.bf16.vlgmr.msra.gmra.mrb[0].mxu1 %v653_v10  ;;  %1031 = vmatmul.mubr.bf16.vlgmr.msra.gmra.mrb[0].mxu0 %v1760_v9 }
 0x1ed   : > { %799 = vmatprep.mubr.bf16.mxu1 %v2055_v42  ;;  %1040 = vmatprep.mubr.bf16.mxu0 %v2055_v42 }
 0x1f4   : > { %800 = vmatmul.mubr.bf16.gmra.mrb[4].mxu1 %v654_v12  ;;  %1041 = vmatmul.mubr.bf16.gmra.mrb[4].mxu0 %v1761_v11 }
 0x1f5   : > { %809 = vmatprep.mubr.bf16.mxu1 %v2055_v42  ;;  %1050 = vmatprep.mubr.bf16.mxu0 %v2055_v42 }
 0x1fc   : > { %810 = vmatmul.mubr.bf16.gmra.mrb[8].mxu1 %v655_v14  ;;  %1051 = vmatmul.mubr.bf16.gmra.mrb[8].mxu0 %v1762_v13 }
 0x1fd   : > { %819 = vmatprep.mubr.bf16.mxu1 %v2055_v42  ;;  %1060 = vmatprep.mubr.bf16.mxu0 %v2055_v42 }
 0x204   : > { %820 = vmatmul.mubr.bf16.gmra.mrb[12].mxu1 %v656_v16  ;;  %1061 = vmatmul.mubr.bf16.gmra.mrb[12].mxu0 %v1763_v15 }
 0x205   : > { %829 = vmatprep.mubr.bf16.mxu1 %v2055_v42  ;;  %1070 = vmatprep.mubr.bf16.mxu0 %v2055_v42 }
 0x20c   : > { %830 = vmatmul.mubr.bf16.gmra.mrb[16].mxu1 %v657_v18  ;;  %1071 = vmatmul.mubr.bf16.gmra.mrb[16].mxu0 %v1764_v17 }
 0x20d   : > { %839 = vmatprep.mubr.bf16.mxu1 %v2055_v42  ;;  %1080 = vmatprep.mubr.bf16.mxu0 %v2055_v42 }
 0x214   : > { %840 = vmatmul.mubr.bf16.gmra.mrb[20].mxu1 %v658_v20  ;;  %1081 = vmatmul.mubr.bf16.gmra.mrb[20].mxu0 %v1765_v19 }
 0x215   : > { %849 = vmatprep.mubr.bf16.mxu1 %v2055_v42  ;;  %1090 = vmatprep.mubr.bf16.mxu0 %v2055_v42 }
 0x21c   : > { %850 = vmatmul.mubr.bf16.gmra.mrb[24].mxu1 %v659_v22  ;;  %1091 = vmatmul.mubr.bf16.gmra.mrb[24].mxu0 %v1766_v21 }
 0x21d   : > { %859 = vmatprep.mubr.bf16.mxu1 %v2055_v42  ;;  %1100 = vmatprep.mubr.bf16.mxu0 %v2055_v42 }
 0x224   : > { %860 = vmatmul.mubr.bf16.gmra.mrb[28].mxu1 %v660_v24  ;;  %1101 = vmatmul.mubr.bf16.gmra.mrb[28].mxu0 %v1767_v23 }
 0x2bf   : > { %v791_v31 = vpop.f32.mrb[0].mxu1  ;;  %v1032_v32 = vpop.f32.mrb[0].mxu0 }
 0x2c0   : > { %v1033_v34 = vadd.f32 %v1032_v32, %v791_v31  ;;  %v793_v35 = vpop.f32.mrb[1].mxu1  ;;  %v1034_v36 = vpop.f32.mrb[1].mxu0 }
 0x2c1   : > { %v1035_v37 = vadd.f32 %v1034_v36, %v793_v35  ;;  %v795_v38 = vpop.f32.mrb[2].mxu1  ;;  %v1036_v39 = vpop.f32.mrb[2].mxu0 }
 0x2c2   : > { %v1123_v40 = vadd.f32 %v2517_v30, %v1033_v34  ;;  %v1037_v41 = vadd.f32 %v1036_v39, %v795_v38  ;;  %v797_v42 = vpop.f32.mrb[3].mxu1  ;;  %v1038_v43 = vpop.f32.mrb[3].mxu0 }
 0x2c3   : > { %v1124_v44 = vadd.f32 %v2519_v33, %v1035_v37  ;;  %v1039_v45 = vadd.f32 %v1038_v43, %v797_v42 }
 0x2c4   : > { %1155 = vst [vmem:[%s2445_s10] sm:$0xff] %v1123_v40  ;;  %v1125_v46 = vadd.f32 %v2517_v30, %v1037_v41 }
 0x2c5   : > { %1156 = vst [vmem:[%s2445_s10 + $0x8] sm:$0xff] %v1124_v44  ;;  %v1126_v47 = vadd.f32 %v2519_v33, %v1039_v45 }
 0x2c6   : > { %1157 = vst [vmem:[%s2445_s10 + $0x10] sm:$0xff] %v1125_v46 }
 0x2c7   : > { %1158 = vst [vmem:[%s2445_s10 + $0x18] sm:$0xff] %v1126_v47  ;;  %v801_v48 = vpop.f32.mrb[4].mxu1  ;;  %v1042_v49 = vpop.f32.mrb[4].mxu0 }
 0x2c8   : > { %v1043_v50 = vadd.f32 %v1042_v49, %v801_v48  ;;  %v803_v51 = vpop.f32.mrb[5].mxu1  ;;  %v1044_v52 = vpop.f32.mrb[5].mxu0 }
 0x2c9   : > { %v1045_v53 = vadd.f32 %v1044_v52, %v803_v51  ;;  %v805_v54 = vpop.f32.mrb[6].mxu1  ;;  %v1046_v55 = vpop.f32.mrb[6].mxu0 }
 0x2ca   : > { %v1127_v56 = vadd.f32 %v2517_v30, %v1043_v50  ;;  %v1047_v57 = vadd.f32 %v1046_v55, %v805_v54  ;;  %v807_v58 = vpop.f32.mrb[7].mxu1  ;;  %v1048_v59 = vpop.f32.mrb[7].mxu0 }
 0x2cb   : > { %v1128_v60 = vadd.f32 %v2519_v33, %v1045_v53  ;;  %v1049_v61 = vadd.f32 %v1048_v59, %v807_v58 }
 0x2cc   : > { %1159 = vst [vmem:[%s2445_s10 + $0x20] sm:$0xff] %v1127_v56  ;;  %v1129_v62 = vadd.f32 %v2517_v30, %v1047_v57 }
 0x2cd   : > { %1160 = vst [vmem:[%s2445_s10 + $0x28] sm:$0xff] %v1128_v60  ;;  %v1130_v63 = vadd.f32 %v2519_v33, %v1049_v61 }
 0x2ce   : > { %1161 = vst [vmem:[%s2445_s10 + $0x30] sm:$0xff] %v1129_v62 }
 0x2cf   : > { %1162 = vst [vmem:[%s2445_s10 + $0x38] sm:$0xff] %v1130_v63  ;;  %v811_v0 = vpop.f32.mrb[8].mxu1  ;;  %v1052_v1 = vpop.f32.mrb[8].mxu0 }
 0x2d0   : > { %v1053_v2 = vadd.f32 %v1052_v1, %v811_v0  ;;  %v813_v3 = vpop.f32.mrb[9].mxu1  ;;  %v1054_v4 = vpop.f32.mrb[9].mxu0 }
 0x2d1   : > { %v1055_v5 = vadd.f32 %v1054_v4, %v813_v3  ;;  %v815_v6 = vpop.f32.mrb[10].mxu1  ;;  %v1056_v7 = vpop.f32.mrb[10].mxu0 }
 0x2d2   : > { %v1131_v8 = vadd.f32 %v2517_v30, %v1053_v2  ;;  %v1057_v9 = vadd.f32 %v1056_v7, %v815_v6  ;;  %v817_v10 = vpop.f32.mrb[11].mxu1  ;;  %v1058_v11 = vpop.f32.mrb[11].mxu0 }
 0x2d3   : > { %v1132_v12 = vadd.f32 %v2519_v33, %v1055_v5  ;;  %v1059_v13 = vadd.f32 %v1058_v11, %v817_v10 }
 0x2d4   : > { %1163 = vst [vmem:[%s2445_s10 + $0x40] sm:$0xff] %v1131_v8  ;;  %v1133_v14 = vadd.f32 %v2517_v30, %v1057_v9 }
 0x2d5   : > { %1164 = vst [vmem:[%s2445_s10 + $0x48] sm:$0xff] %v1132_v12  ;;  %v1134_v15 = vadd.f32 %v2519_v33, %v1059_v13 }
 0x2d6   : > { %1165 = vst [vmem:[%s2445_s10 + $0x50] sm:$0xff] %v1133_v14 }
 0x2d7   : > { %1166 = vst [vmem:[%s2445_s10 + $0x58] sm:$0xff] %v1134_v15  ;;  %v821_v16 = vpop.f32.mrb[12].mxu1  ;;  %v1062_v17 = vpop.f32.mrb[12].mxu0 }
 0x2d8   : > { %v1063_v18 = vadd.f32 %v1062_v17, %v821_v16  ;;  %v823_v19 = vpop.f32.mrb[13].mxu1  ;;  %v1064_v20 = vpop.f32.mrb[13].mxu0 }
 0x2d9   : > { %v1065_v21 = vadd.f32 %v1064_v20, %v823_v19  ;;  %v825_v22 = vpop.f32.mrb[14].mxu1  ;;  %v1066_v23 = vpop.f32.mrb[14].mxu0 }
 0x2da   : > { %v1135_v24 = vadd.f32 %v2517_v30, %v1063_v18  ;;  %v1067_v25 = vadd.f32 %v1066_v23, %v825_v22  ;;  %v827_v26 = vpop.f32.mrb[15].mxu1  ;;  %v1068_v27 = vpop.f32.mrb[15].mxu0 }
 0x2db   : > { %v1136_v28 = vadd.f32 %v2519_v33, %v1065_v21  ;;  %v1069_v29 = vadd.f32 %v1068_v27, %v827_v26 }
 0x2dc   : > { %1167 = vst [vmem:[%s2445_s10 + $0x60] sm:$0xff] %v1135_v24  ;;  %v1137_v31 = vadd.f32 %v2517_v30, %v1067_v25 }
 0x2dd   : > { %1168 = vst [vmem:[%s2445_s10 + $0x68] sm:$0xff] %v1136_v28  ;;  %v1138_v32 = vadd.f32 %v2519_v33, %v1069_v29 }
 0x2de   : > { %1169 = vst [vmem:[%s2445_s10 + $0x70] sm:$0xff] %v1137_v31 }
 0x2df   : > { %1170 = vst [vmem:[%s2445_s10 + $0x78] sm:$0xff] %v1138_v32  ;;  %v831_v34 = vpop.f32.mrb[16].mxu1  ;;  %v1072_v35 = vpop.f32.mrb[16].mxu0 }
 0x2e0   : > { %v1073_v36 = vadd.f32 %v1072_v35, %v831_v34  ;;  %v833_v37 = vpop.f32.mrb[17].mxu1  ;;  %v1074_v38 = vpop.f32.mrb[17].mxu0 }
 0x2e1   : > { %v1075_v39 = vadd.f32 %v1074_v38, %v833_v37  ;;  %v835_v40 = vpop.f32.mrb[18].mxu1  ;;  %v1076_v41 = vpop.f32.mrb[18].mxu0 }
 0x2e2   : > { %v1139_v42 = vadd.f32 %v2517_v30, %v1073_v36  ;;  %v1077_v43 = vadd.f32 %v1076_v41, %v835_v40  ;;  %v837_v44 = vpop.f32.mrb[19].mxu1  ;;  %v1078_v45 = vpop.f32.mrb[19].mxu0 }
 0x2e3   : > { %v1140_v46 = vadd.f32 %v2519_v33, %v1075_v39  ;;  %v1079_v47 = vadd.f32 %v1078_v45, %v837_v44 }
 0x2e4   : > { %1171 = vst [vmem:[%s2445_s10 + $0x80] sm:$0xff] %v1139_v42  ;;  %v1141_v48 = vadd.f32 %v2517_v30, %v1077_v43 }
 0x2e5   : > { %1172 = vst [vmem:[%s2445_s10 + $0x88] sm:$0xff] %v1140_v46  ;;  %v1142_v49 = vadd.f32 %v2519_v33, %v1079_v47 }
 0x2e6   : > { %1173 = vst [vmem:[%s2445_s10 + $0x90] sm:$0xff] %v1141_v48 }
 0x2e7   : > { %1174 = vst [vmem:[%s2445_s10 + $0x98] sm:$0xff] %v1142_v49  ;;  %v841_v50 = vpop.f32.mrb[20].mxu1  ;;  %v1082_v51 = vpop.f32.mrb[20].mxu0 }
 0x2e8   : > { %v1083_v52 = vadd.f32 %v1082_v51, %v841_v50  ;;  %v843_v53 = vpop.f32.mrb[21].mxu1  ;;  %v1084_v54 = vpop.f32.mrb[21].mxu0 }
 0x2e9   : > { %v1085_v55 = vadd.f32 %v1084_v54, %v843_v53  ;;  %v845_v56 = vpop.f32.mrb[22].mxu1  ;;  %v1086_v57 = vpop.f32.mrb[22].mxu0 }
 0x2ea   : > { %v1143_v58 = vadd.f32 %v2517_v30, %v1083_v52  ;;  %v1087_v59 = vadd.f32 %v1086_v57, %v845_v56  ;;  %v847_v60 = vpop.f32.mrb[23].mxu1  ;;  %v1088_v61 = vpop.f32.mrb[23].mxu0 }
 0x2eb   : > { %v1144_v62 = vadd.f32 %v2519_v33, %v1085_v55  ;;  %v1089_v63 = vadd.f32 %v1088_v61, %v847_v60 }
 0x2ec   : > { %1175 = vst [vmem:[%s2445_s10 + $0xa0] sm:$0xff] %v1143_v58  ;;  %v1145_v0 = vadd.f32 %v2517_v30, %v1087_v59 }
 0x2ed   : > { %1176 = vst [vmem:[%s2445_s10 + $0xa8] sm:$0xff] %v1144_v62  ;;  %v1146_v1 = vadd.f32 %v2519_v33, %v1089_v63 }
 0x2ee   : > { %1177 = vst [vmem:[%s2445_s10 + $0xb0] sm:$0xff] %v1145_v0 }
 0x2ef   : > { %1178 = vst [vmem:[%s2445_s10 + $0xb8] sm:$0xff] %v1146_v1  ;;  %v851_v2 = vpop.f32.mrb[24].mxu1  ;;  %v1092_v3 = vpop.f32.mrb[24].mxu0 }
 0x2f0   : > { %v1093_v4 = vadd.f32 %v1092_v3, %v851_v2  ;;  %v853_v5 = vpop.f32.mrb[25].mxu1  ;;  %v1094_v6 = vpop.f32.mrb[25].mxu0 }
 0x2f1   : > { %v1095_v7 = vadd.f32 %v1094_v6, %v853_v5  ;;  %v855_v8 = vpop.f32.mrb[26].mxu1  ;;  %v1096_v9 = vpop.f32.mrb[26].mxu0 }
 0x2f2   : > { %v1147_v10 = vadd.f32 %v2517_v30, %v1093_v4  ;;  %v1097_v11 = vadd.f32 %v1096_v9, %v855_v8  ;;  %v857_v12 = vpop.f32.mrb[27].mxu1  ;;  %v1098_v13 = vpop.f32.mrb[27].mxu0 }
 0x2f3   : > { %v1148_v14 = vadd.f32 %v2519_v33, %v1095_v7  ;;  %v1099_v15 = vadd.f32 %v1098_v13, %v857_v12 }
 0x2f4   : > { %1179 = vst [vmem:[%s2445_s10 + $0xc0] sm:$0xff] %v1147_v10  ;;  %v1149_v16 = vadd.f32 %v2517_v30, %v1097_v11 }
 0x2f5   : > { %1180 = vst [vmem:[%s2445_s10 + $0xc8] sm:$0xff] %v1148_v14  ;;  %v1150_v17 = vadd.f32 %v2519_v33, %v1099_v15 }
 0x2f6   : > { %1181 = vst [vmem:[%s2445_s10 + $0xd0] sm:$0xff] %v1149_v16 }
 0x2f7   : > { %1182 = vst [vmem:[%s2445_s10 + $0xd8] sm:$0xff] %v1150_v17  ;;  %v861_v18 = vpop.f32.mrb[28].mxu1  ;;  %v1102_v19 = vpop.f32.mrb[28].mxu0 }
 0x2f8   : > { %v1103_v20 = vadd.f32 %v1102_v19, %v861_v18  ;;  %v863_v21 = vpop.f32.mrb[29].mxu1  ;;  %v1104_v22 = vpop.f32.mrb[29].mxu0 }
 0x2f9   : > { %v1105_v23 = vadd.f32 %v1104_v22, %v863_v21  ;;  %v865_v24 = vpop.f32.mrb[30].mxu1  ;;  %v1106_v25 = vpop.f32.mrb[30].mxu0 }
 0x2fa   : > { %v1151_v26 = vadd.f32 %v2517_v30, %v1103_v20  ;;  %v1107_v27 = vadd.f32 %v1106_v25, %v865_v24  ;;  %v867_v28 = vpop.f32.mrb[31].mxu1  ;;  %v1108_v29 = vpop.f32.mrb[31].mxu0 }
 0x2fb   : > { %v1152_v31 = vadd.f32 %v2519_v33, %v1105_v23  ;;  %v1109_v32 = vadd.f32 %v1108_v29, %v867_v28 }
 0x2fc   : > { %1183 = vst [vmem:[%s2445_s10 + $0xe0] sm:$0xff] %v1151_v26  ;;  %v1153_v34 = vadd.f32 %v2517_v30, %v1107_v27 }
 0x2fd   : > { %1184 = vst [vmem:[%s2445_s10 + $0xe8] sm:$0xff] %v1152_v31  ;;  %v1154_v35 = vadd.f32 %v2519_v33, %v1109_v32 }
 0x2fe   : > { %1185 = vst [vmem:[%s2445_s10 + $0xf0] sm:$0xff] %v1153_v34 }
 0x2ff   : > { %1186 = vst [vmem:[%s2445_s10 + $0xf8] sm:$0xff] %v1154_v35 }
 0x300   : > { %1899 = shalt.err (!%p1896_p1)
}
 0x301   : > { %s1900_s18 = scalar_lea.hbm %s2585_s7, 4096  ;;  %s1904_s3 = scalar_lea.hbm %s2743_s14, 16384 }
 0x302   : > { %p1901_p9 = scmp.ne.s32.totalorder %s2585_s7, %s1900_s18  ;;  %p1905_p10 = scmp.lt.u32.totalorder %s2585_s7, %s2743_s14 }
 0x303   : > { %p1906_p12 = scmp.lt.u32.totalorder %s1904_s3, %s1900_s18  ;;  %p1908_p4 = scmp.lt.u32.totalorder %s1900_s18, %s2585_s7 }
 0x304   : > { %p1902_p13 = pnand %p1901_p9, %p2744_p5 }
 0x305   : > { %p1907_p11 = por %p1906_p12, %p1905_p10 }
 0x306   : > { %p1903_p6 = pneg %p1902_p13 }
 0x307   : > { %p1909_p7 = por %p1908_p4, %p1907_p11 }
 0x309   : > { %p1910_p0 = pnand %p1909_p7, %p1903_p6 }
 0x30b   : > { %1913 = shalt.err (!%p1910_p0)
}
 0x30c   : > { %s2057_s1 = smov 256   ;;  %s2058_s24 = smov 512  }
 0x30d   : > { %s2059_s13 = smov 16  }
 0x30e   : > { %1550 = dma.vmem_to_hbm [thread:$0]  (%p2744_p5), %s2589_s9, 4096, %s2585_s7, %s2597_s0, %s2057_s1, %s2058_s24, %s2059_s13  }
 0x30f PF: > { %s2745_s12 = sld [smem:[#allocation17_spill]]  ;;  %s2746_s27 = sld [smem:[#allocation23_spill]] }
 0x310   : > { %p1573_p8 = scmp.ge.s32.totalorder %s2044_s6, 2 }
 0x315   : > { %s1219_s15 = sand.u32 1, %s2745_s12   ;;  %p2747_p3 = scmp.ne.s32.totalorder %s2746_s27, 0 }
 0x316   : > { %s1220_s5 = scalar_lea.sflag [#allocation5], %s1219_s15 }
 0x317   : > { %p1567_p2 = pnand %p1573_p8, %p2747_p3 }
 0x319   : > { %1987 = dma.done.wait (!%p1567_p2), %s1220_s5, 4096  }
 0x31a   : > { %1989 = vsyncadd (!%p1567_p2), %s1220_s5, 4294963200  ;;  %s27_s6 = sadd.s32 1, %s2044_s6   ;;  %s2749_s18 = sld [smem:[#allocation18_spill]] }
 0x31b   : > { %p2626_p1 = scmp.ge.s32.totalorder %s27_s6, 6   ;;  %s2750_s9 = sld [smem:[#allocation26_spill]] }
 0x31c   : > { %s2751_s17 = smov %s2255_s21  ;;  %s2752_s28 = sld [smem:[#allocation21_spill]] }
 0x31d   : > { %s2753_s7 = sld [smem:[#allocation24_spill]]  ;;  %s2754_s30 = sld [smem:[#allocation25_spill]] }
 0x31e   : > { %s2755_s19 = smov %s2000_s20  ;;  %s2756_s20 = smov %s2258_s11 }
 0x31f   : > { %s2757_s21 = smov %s2008_s22  ;;  %s2758_s22 = smov %s2012_s23 }
 0x320   : > { %s2760_s24 = smov %s2020_s25  ;;  %s2761_s25 = smov %s2024_s26 }
 0x321   : > { %s2759_s23 = smov %s2750_s9  ;;  %s2762_s26 = smov %s2751_s17 }
 0x322   : > { %s2763_s27 = smov %s2036_s29  ;;  %26 = sbr.rel (!%p2626_p1) target bundleno = 20 (0x14), region = 122 }
 0x323   : > { %s2764_s29 = smov %s2753_s7 }
 0x329   :  { %1225 = vsyncpa [#allocation4], 1 }
 0x32a   :  { %1227 = vsyncpa [#allocation4 + $0x1], 1 }
 0x32b   :  { %1228 = vsyncpa [#allocation7], 1 }
 0x32c   :  { %1230 = vsyncpa [#allocation7 + $0x1], 1 }
 0x32d   :  { %1231 = vsyncpa [#allocation10], 1 }
 0x32e   :  { %1233 = vsyncpa [#allocation10 + $0x1], 1 }
 0x32f   :  { %1234 = vsyncpa [#allocation5], 1 }
 0x330   :  { %1236 = vsyncpa [#allocation5 + $0x1], 1 }

</bundles_post_ra>
